<compile_context>
chip_gen: v5e
topology: v5e:2x2
jax: 0.10.0
libtpu: 0.0.40
codegen_flags: <defaults>
</compile_context>

<pallas_src>
import functools
import numpy as np
import jax
import jax.numpy as jnp
from jax.experimental import pallas as pl
from jax.experimental.pallas import tpu as pltpu


def _transition_kernel(x_ref, w_ref, shift_ref, pw_ref, *rest, thc, wp, masked):
    # x_ref:     (1, Cin, S)   S = TH*Wp, row-major (H, W) slab of one image (bf16)
    # w_ref:     (Cout, Cin)   1x1 conv weight with BN scale folded in (bf16)
    # shift_ref: (Cout, 1)     beta - mean * scale (f32)
    # pw_ref:    (Wp, Wc)      W-direction pooling matrix, 0.25 taps (f32)
    # [mask_ref: (1, S), recip_ref: (1, THc*Wc)]  only for ceil-mode padded sizes
    # o_ref:     (1, Cout, THc*Wc)
    if masked:
        mask_ref, recip_ref, o_ref = rest
    else:
        (o_ref,) = rest

    x = x_ref[0]                                   # (Cin, S)
    w = w_ref[...]                                 # (Cout, Cin)
    y = jnp.dot(w, x, preferred_element_type=jnp.float32)   # 1x1 conv -> (Cout, S) f32
    y = y + shift_ref[...]                         # BatchNorm2d (eval): scale folded into w
    y = jnp.maximum(y, 0.0)                        # ReLU
    # TODO(synk): Dropout(p=0.2) is identity in eval mode; training-mode RNG dropout not implemented.
    if masked:
        y = y * mask_ref[...]                      # zero ceil-mode padding (must be after ReLU)

    pw = pw_ref[...]                               # (Wp, Wc)
    rows = []
    for i in range(thc):                           # static unroll: one 2-row pool strip per iter
        top = y[:, (2 * i) * wp:(2 * i + 1) * wp]          # image row 2i     (Cout, Wp)
        bot = y[:, (2 * i + 1) * wp:(2 * i + 2) * wp]      # image row 2i + 1 (Cout, Wp)
        rows.append(jnp.dot(top + bot, pw, preferred_element_type=jnp.float32))  # (Cout, Wc)
    out = jnp.concatenate(rows, axis=1) if thc > 1 else rows[0]   # (Cout, THc*Wc)
    if masked:
        out = out * recip_ref[...]                 # clipped-window divisor fix-up (4 / count)
    o_ref[0] = out.astype(o_ref.dtype)


def _choose_row_tile(Hp, Wp, Cin, Cout, budget_bytes=2 * 1024 * 1024):
    """Largest even row-tile TH (dividing Hp) whose per-step footprint fits the budget
    and whose flattened block dims stay Pallas-legal (multiple of 128 unless full)."""
    def tile_bytes(TH):
        S = TH * Wp
        return S * Cin * 2 + S * Cout * 4 + (TH // 2) * (Wp // 2) * Cout * 4

    if tile_bytes(Hp) <= budget_bytes:
        return Hp
    smallest_legal = None
    for TH in range(Hp - 2, 0, -2):
        if Hp % TH:
            continue
        if (TH * Wp) % 128 or ((TH // 2) * (Wp // 2)) % 128:
            continue
        if tile_bytes(TH) <= budget_bytes:
            return TH
        smallest_legal = TH
    return smallest_legal if smallest_legal is not None else Hp


def transition_forward(x_nchw, conv_w, bn_gamma, bn_beta, bn_mean, bn_var, eps=1e-5):
    N, Cin, H, W = x_nchw.shape
    Cout = conv_w.shape[0]
    Hc, Wc = -(-H // 2), -(-W // 2)          # ceil_mode output size
    Hp, Wp = 2 * Hc, 2 * Wc                   # padded (even) spatial size
    odd = (Hp != H) or (Wp != W)

    # ---- wrapper-side constant folding (no HBM transposes, reshapes are free) ----
    inv_std = 1.0 / jnp.sqrt(bn_var.astype(jnp.float32) + eps)
    scale = bn_gamma.astype(jnp.float32) * inv_std                       # (Cout,)
    w_f = (conv_w.reshape(Cout, Cin).astype(jnp.float32)
           * scale[:, None]).astype(jnp.bfloat16)                        # (Cout, Cin)
    shift = (bn_beta.astype(jnp.float32)
             - bn_mean.astype(jnp.float32) * scale).reshape(Cout, 1)     # (Cout, 1)

    x = x_nchw
    if odd:
        x = jnp.pad(x, ((0, 0), (0, 0), (0, Hp - H), (0, Wp - W)))
    x = x.reshape(N, Cin, Hp * Wp).astype(jnp.bfloat16)                  # free reshape + bf16

    # W-direction pooling matrix: out[:, j] gets 0.25 * (col 2j + col 2j+1)
    pw_np = np.zeros((Wp, Wc), np.float32)
    for j in range(Wc):
        pw_np[2 * j, j] = 0.25
        pw_np[2 * j + 1, j] = 0.25
    pw = jnp.asarray(pw_np)

    TH = _choose_row_tile(Hp, Wp, Cin, Cout)
    THc = TH // 2
    n_tiles = Hp // TH
    S = TH * Wp

    kernel = functools.partial(_transition_kernel, thc=THc, wp=Wp, masked=odd)

    in_arrays = [x, w_f, shift, pw]
    in_specs = [
        pl.BlockSpec((1, Cin, S), lambda n, h: (n, 0, h)),
        pl.BlockSpec((Cout, Cin), lambda n, h: (0, 0)),
        pl.BlockSpec((Cout, 1), lambda n, h: (0, 0)),
        pl.BlockSpec((Wp, Wc), lambda n, h: (0, 0)),
    ]
    if odd:
        # Validity mask over padded pixels + 4/count divisor fix-up for clipped windows.
        row = np.arange(Hp)[:, None]
        col = np.arange(Wp)[None, :]
        mask = ((row < H) & (col < W)).astype(np.float32).reshape(1, Hp * Wp)
        hcnt = np.minimum(2, H - 2 * np.arange(Hc))[:, None].astype(np.float32)
        wcnt = np.minimum(2, W - 2 * np.arange(Wc))[None, :].astype(np.float32)
        recip = (4.0 / (hcnt * wcnt)).reshape(1, Hc * Wc).astype(np.float32)
        in_arrays += [jnp.asarray(mask), jnp.asarray(recip)]
        in_specs += [
            pl.BlockSpec((1, S), lambda n, h: (0, h)),
            pl.BlockSpec((1, THc * Wc), lambda n, h: (0, h)),
        ]

    out = pl.pallas_call(
        kernel,
        out_shape=jax.ShapeDtypeStruct((N, Cout, Hc * Wc), jnp.float32),
        grid_spec=pltpu.PrefetchScalarGridSpec(
            num_scalar_prefetch=0,
            grid=(N, n_tiles),
            in_specs=in_specs,
            out_specs=pl.BlockSpec((1, Cout, THc * Wc), lambda n, h: (n, 0, h)),
        ),
        compiler_params=pltpu.CompilerParams(
            dimension_semantics=("parallel", "parallel"),
            vmem_limit_bytes=32 * 1024 * 1024,
        ),
    )(*in_arrays)

    # Already NCHW-ordered; only a free reshape remains.
    return out.reshape(N, Cout, Hc, Wc)


def reference_forward(x, conv_w, gamma, beta, mean, var, eps=1e-5):
    """Pure JAX/NumPy reference (f32), including ceil_mode clipped-divisor pooling."""
    Cout, Cin = conv_w.shape[0], conv_w.shape[1]
    y = jnp.einsum("nchw,oc->nohw", x, conv_w.reshape(Cout, Cin))
    inv_std = 1.0 / jnp.sqrt(var + eps)
    y = (y - mean[None, :, None, None]) * (gamma * inv_std)[None, :, None, None] \
        + beta[None, :, None, None]
    y = jnp.maximum(y, 0.0)
    ya = np.asarray(y)
    N, C, H, W = ya.shape
    Hc, Wc = -(-H // 2), -(-W // 2)
    out = np.zeros((N, C, Hc, Wc), np.float32)
    for i in range(Hc):
        for j in range(Wc):
            win = ya[:, :, 2 * i:min(2 * i + 2, H), 2 * j:min(2 * j + 2, W)]
            out[:, :, i, j] = win.mean(axis=(2, 3))
    return out


if __name__ == "__main__":
    def make_params(key, N, Cin, Cout, H, W):
        ks = jax.random.split(key, 6)
        x = jax.random.normal(ks[0], (N, Cin, H, W), jnp.float32)
        conv_w = jax.random.normal(ks[1], (Cout, Cin, 1, 1), jnp.float32) * 0.1
        gamma = jax.random.normal(ks[2], (Cout,), jnp.float32) * 0.1 + 1.0
        beta = jax.random.normal(ks[3], (Cout,), jnp.float32) * 0.1
        mean = jax.random.normal(ks[4], (Cout,), jnp.float32) * 0.1
        var = jax.random.uniform(ks[5], (Cout,), jnp.float32) * 0.5 + 0.5
        return x, conv_w, gamma, beta, mean, var

    k1, k2 = jax.random.split(jax.random.PRNGKey(0))

    # Transition(nChannels=4, nOutChannels=8), batch 2, 16x16 spatial (even path).
    args = make_params(k1, 2, 4, 8, 16, 16)
    out = jax.block_until_ready(transition_forward(*args))
    ref = reference_forward(*args)
    assert out.shape == (2, 8, 8, 8), out.shape
    # bf16 conv inputs -> loosened tolerance vs the f32 reference.
    assert np.allclose(np.asarray(out), ref, atol=2e-2, rtol=2e-2)

    # Odd spatial size exercises the avg_pool2d ceil_mode / clipped-divisor path.
    args_odd = make_params(k2, 1, 4, 8, 9, 7)
    out_odd = jax.block_until_ready(transition_forward(*args_odd))
    ref_odd = reference_forward(*args_odd)
    assert out_odd.shape == (1, 8, 5, 4), out_odd.shape
    assert np.allclose(np.asarray(out_odd), ref_odd, atol=2e-2, rtol=2e-2)

    print("KERNEL_OK")
</pallas_src>

<mosaic_0001>
module attributes {stable_mosaic.version = 11 : i64} {
  func.func @_transition_kernel(%arg0: i32, %arg1: i32, %arg2: memref<1x4x256xbf16, #tpu.memory_space<vmem>>, %arg3: memref<8x4xbf16, #tpu.memory_space<vmem>>, %arg4: memref<8x1xf32, #tpu.memory_space<vmem>>, %arg5: memref<16x8xf32, #tpu.memory_space<vmem>>, %arg6: memref<1x8x64xf32, #tpu.memory_space<vmem>>) attributes {dimension_semantics = [#tpu.dimension_semantics<parallel>, #tpu.dimension_semantics<parallel>], iteration_bounds = array<i64: 2, 1>, scalar_prefetch = 0 : i64, scratch_operands = 0 : i64, tpu.core_type = #tpu.core_type<tc>, window_params = [{transform_indices = @transform_0, window_bounds = array<i64: 1, 4, 256>}, {pipeline_mode = #tpu.pipeline_mode<synchronous>, transform_indices = @transform_1, window_bounds = array<i64: 8, 4>}, {pipeline_mode = #tpu.pipeline_mode<synchronous>, transform_indices = @transform_2, window_bounds = array<i64: 8, 1>}, {pipeline_mode = #tpu.pipeline_mode<synchronous>, transform_indices = @transform_3, window_bounds = array<i64: 16, 8>}, {transform_indices = @transform_4, window_bounds = array<i64: 1, 8, 64>}]} {
    %c0 = arith.constant 0 : index
    %c0_0 = arith.constant 0 : index
    %c0_1 = arith.constant 0 : index
    %0 = vector.load %arg2[%c0, %c0_0, %c0_1] : memref<1x4x256xbf16, #tpu.memory_space<vmem>>, vector<1x4x256xbf16>
    %1 = vector.shape_cast %0 : vector<1x4x256xbf16> to vector<4x256xbf16>
    %c0_2 = arith.constant 0 : index
    %c0_3 = arith.constant 0 : index
    %2 = vector.load %arg3[%c0_2, %c0_3] : memref<8x4xbf16, #tpu.memory_space<vmem>>, vector<8x4xbf16>
    %cst = arith.constant dense<0.000000e+00> : vector<8x256xf32>
    %3 = tpu.matmul %2, %1, %cst {dimension_numbers = #tpu.dot_dimension_numbers<[1], [0], [0], [1], [0, 0, 1, 1], [], []>} : vector<8x4xbf16>, vector<4x256xbf16>, vector<8x256xf32> -> vector<8x256xf32>
    %c0_4 = arith.constant 0 : index
    %c0_5 = arith.constant 0 : index
    %4 = vector.load %arg4[%c0_4, %c0_5] : memref<8x1xf32, #tpu.memory_space<vmem>>, vector<8x1xf32>
    %5 = vector.broadcast %4 : vector<8x1xf32> to vector<8x256xf32>
    %6 = arith.addf %3, %5 : vector<8x256xf32>
    %cst_6 = arith.constant 0.000000e+00 : f32
    %7 = vector.broadcast %cst_6 : f32 to vector<8x256xf32>
    %8 = arith.maximumf %6, %7 : vector<8x256xf32>
    %c0_7 = arith.constant 0 : index
    %c0_8 = arith.constant 0 : index
    %9 = vector.load %arg5[%c0_7, %c0_8] : memref<16x8xf32, #tpu.memory_space<vmem>>, vector<16x8xf32>
    %10 = vector.extract_strided_slice %8 {offsets = [0, 0], sizes = [8, 16], strides = [1, 1]} : vector<8x256xf32> to vector<8x16xf32>
    %11 = vector.extract_strided_slice %8 {offsets = [0, 16], sizes = [8, 16], strides = [1, 1]} : vector<8x256xf32> to vector<8x16xf32>
    %12 = arith.addf %10, %11 : vector<8x16xf32>
    %cst_9 = arith.constant dense<0.000000e+00> : vector<8x8xf32>
    %13 = tpu.matmul %12, %9, %cst_9 {dimension_numbers = #tpu.dot_dimension_numbers<[1], [0], [0], [1], [0, 0, 1, 1], [], []>} : vector<8x16xf32>, vector<16x8xf32>, vector<8x8xf32> -> vector<8x8xf32>
    %14 = vector.extract_strided_slice %8 {offsets = [0, 32], sizes = [8, 16], strides = [1, 1]} : vector<8x256xf32> to vector<8x16xf32>
    %15 = vector.extract_strided_slice %8 {offsets = [0, 48], sizes = [8, 16], strides = [1, 1]} : vector<8x256xf32> to vector<8x16xf32>
    %16 = arith.addf %14, %15 : vector<8x16xf32>
    %cst_10 = arith.constant dense<0.000000e+00> : vector<8x8xf32>
    %17 = tpu.matmul %16, %9, %cst_10 {dimension_numbers = #tpu.dot_dimension_numbers<[1], [0], [0], [1], [0, 0, 1, 1], [], []>} : vector<8x16xf32>, vector<16x8xf32>, vector<8x8xf32> -> vector<8x8xf32>
    %18 = vector.extract_strided_slice %8 {offsets = [0, 64], sizes = [8, 16], strides = [1, 1]} : vector<8x256xf32> to vector<8x16xf32>
    %19 = vector.extract_strided_slice %8 {offsets = [0, 80], sizes = [8, 16], strides = [1, 1]} : vector<8x256xf32> to vector<8x16xf32>
    %20 = arith.addf %18, %19 : vector<8x16xf32>
    %cst_11 = arith.constant dense<0.000000e+00> : vector<8x8xf32>
    %21 = tpu.matmul %20, %9, %cst_11 {dimension_numbers = #tpu.dot_dimension_numbers<[1], [0], [0], [1], [0, 0, 1, 1], [], []>} : vector<8x16xf32>, vector<16x8xf32>, vector<8x8xf32> -> vector<8x8xf32>
    %22 = vector.extract_strided_slice %8 {offsets = [0, 96], sizes = [8, 16], strides = [1, 1]} : vector<8x256xf32> to vector<8x16xf32>
    %23 = vector.extract_strided_slice %8 {offsets = [0, 112], sizes = [8, 16], strides = [1, 1]} : vector<8x256xf32> to vector<8x16xf32>
    %24 = arith.addf %22, %23 : vector<8x16xf32>
    %cst_12 = arith.constant dense<0.000000e+00> : vector<8x8xf32>
    %25 = tpu.matmul %24, %9, %cst_12 {dimension_numbers = #tpu.dot_dimension_numbers<[1], [0], [0], [1], [0, 0, 1, 1], [], []>} : vector<8x16xf32>, vector<16x8xf32>, vector<8x8xf32> -> vector<8x8xf32>
    %26 = vector.extract_strided_slice %8 {offsets = [0, 128], sizes = [8, 16], strides = [1, 1]} : vector<8x256xf32> to vector<8x16xf32>
    %27 = vector.extract_strided_slice %8 {offsets = [0, 144], sizes = [8, 16], strides = [1, 1]} : vector<8x256xf32> to vector<8x16xf32>
    %28 = arith.addf %26, %27 : vector<8x16xf32>
    %cst_13 = arith.constant dense<0.000000e+00> : vector<8x8xf32>
    %29 = tpu.matmul %28, %9, %cst_13 {dimension_numbers = #tpu.dot_dimension_numbers<[1], [0], [0], [1], [0, 0, 1, 1], [], []>} : vector<8x16xf32>, vector<16x8xf32>, vector<8x8xf32> -> vector<8x8xf32>
    %30 = vector.extract_strided_slice %8 {offsets = [0, 160], sizes = [8, 16], strides = [1, 1]} : vector<8x256xf32> to vector<8x16xf32>
    %31 = vector.extract_strided_slice %8 {offsets = [0, 176], sizes = [8, 16], strides = [1, 1]} : vector<8x256xf32> to vector<8x16xf32>
    %32 = arith.addf %30, %31 : vector<8x16xf32>
    %cst_14 = arith.constant dense<0.000000e+00> : vector<8x8xf32>
    %33 = tpu.matmul %32, %9, %cst_14 {dimension_numbers = #tpu.dot_dimension_numbers<[1], [0], [0], [1], [0, 0, 1, 1], [], []>} : vector<8x16xf32>, vector<16x8xf32>, vector<8x8xf32> -> vector<8x8xf32>
    %34 = vector.extract_strided_slice %8 {offsets = [0, 192], sizes = [8, 16], strides = [1, 1]} : vector<8x256xf32> to vector<8x16xf32>
    %35 = vector.extract_strided_slice %8 {offsets = [0, 208], sizes = [8, 16], strides = [1, 1]} : vector<8x256xf32> to vector<8x16xf32>
    %36 = arith.addf %34, %35 : vector<8x16xf32>
    %cst_15 = arith.constant dense<0.000000e+00> : vector<8x8xf32>
    %37 = tpu.matmul %36, %9, %cst_15 {dimension_numbers = #tpu.dot_dimension_numbers<[1], [0], [0], [1], [0, 0, 1, 1], [], []>} : vector<8x16xf32>, vector<16x8xf32>, vector<8x8xf32> -> vector<8x8xf32>
    %38 = vector.extract_strided_slice %8 {offsets = [0, 224], sizes = [8, 16], strides = [1, 1]} : vector<8x256xf32> to vector<8x16xf32>
    %39 = vector.extract_strided_slice %8 {offsets = [0, 240], sizes = [8, 16], strides = [1, 1]} : vector<8x256xf32> to vector<8x16xf32>
    %40 = arith.addf %38, %39 : vector<8x16xf32>
    %cst_16 = arith.constant dense<0.000000e+00> : vector<8x8xf32>
    %41 = tpu.matmul %40, %9, %cst_16 {dimension_numbers = #tpu.dot_dimension_numbers<[1], [0], [0], [1], [0, 0, 1, 1], [], []>} : vector<8x16xf32>, vector<16x8xf32>, vector<8x8xf32> -> vector<8x8xf32>
    %42 = tpu.concatenate %13, %17, %21, %25, %29, %33, %37, %41 in 1 : vector<8x8xf32>, vector<8x8xf32>, vector<8x8xf32>, vector<8x8xf32>, vector<8x8xf32>, vector<8x8xf32>, vector<8x8xf32>, vector<8x8xf32> -> vector<8x64xf32>
    %c0_17 = arith.constant 0 : index
    %c0_18 = arith.constant 0 : index
    %c0_19 = arith.constant 0 : index
    %43 = vector.load %arg6[%c0_17, %c0_18, %c0_19] : memref<1x8x64xf32, #tpu.memory_space<vmem>>, vector<1x8x64xf32>
    %44 = vector.shape_cast %43 : vector<1x8x64xf32> to vector<8x64xf32>
    %45 = vector.shape_cast %42 : vector<8x64xf32> to vector<1x8x64xf32>
    tpu.vector_store %arg6[%c0_17, %c0_18, %c0_19], %45 {strides = array<i32>} : memref<1x8x64xf32, #tpu.memory_space<vmem>>, vector<1x8x64xf32>,
    return
  }
  func.func @transform_0(%arg0: i32, %arg1: i32) -> (i32, i32, i32) {
    %c0_i32 = arith.constant 0 : i32
    %c0_i32_0 = arith.constant 0 : i32
    return %arg0, %c0_i32, %arg1 : i32, i32, i32
  }
  func.func @transform_1(%arg0: i32, %arg1: i32) -> (i32, i32) {
    %c0_i32 = arith.constant 0 : i32
    %c0_i32_0 = arith.constant 0 : i32
    %c0_i32_1 = arith.constant 0 : i32
    return %c0_i32, %c0_i32_0 : i32, i32
  }
  func.func @transform_2(%arg0: i32, %arg1: i32) -> (i32, i32) {
    %c0_i32 = arith.constant 0 : i32
    %c0_i32_0 = arith.constant 0 : i32
    %c0_i32_1 = arith.constant 0 : i32
    return %c0_i32, %c0_i32_0 : i32, i32
  }
  func.func @transform_3(%arg0: i32, %arg1: i32) -> (i32, i32) {
    %c0_i32 = arith.constant 0 : i32
    %c0_i32_0 = arith.constant 0 : i32
    %c0_i32_1 = arith.constant 0 : i32
    return %c0_i32, %c0_i32_0 : i32, i32
  }
  func.func @transform_4(%arg0: i32, %arg1: i32) -> (i32, i32, i32) {
    %c0_i32 = arith.constant 0 : i32
    %c0_i32_0 = arith.constant 0 : i32
    return %arg0, %c0_i32, %arg1 : i32, i32, i32
  }
}

</mosaic_0001>

<bundles_post_ra>
// kernel: tpu_custom_call.1
= control target key start
LH: loop header
LB: loop body
LE: loop exit
PB: predicated region body
PF: predicated region fallthrough
CT: control target
= control target key end

     0   :  { %9 = vsyncpa [#allocation3], 0  ;;  %s937_s0 = inlined_call_operand.vmem [shape: bf16[2,4,256], index: 0, kind: input, shape index: {}]   ;;  %s938_s1 = inlined_call_operand.vmem [shape: bf16[8,4], index: 1, kind: input, shape index: {}]   ;;  %s939_s2 = inlined_call_operand.vmem [shape: f32[8,1], index: 2, kind: input, shape index: {}]   ;;  %s940_s3 = inlined_call_operand.vmem [shape: f32[16,8], index: 3, kind: input, shape index: {}]   ;;  %s941_s4 = inlined_call_operand.hbm [shape: f32[2,8,64], index: 4, kind: output, shape index: {}]  }
   0x1   :  { %11 = vsyncpa [#allocation3 + $0x1], 0  ;;  %s819_s15 = smov 0   ;;  %s821_s16 = smov 0  }
   0x2   :  { %s823_s17 = smov 0   ;;  %s825_s18 = smov 0  }
   0x3   :  { %s827_s19 = smov 0   ;;  %s829_s20 = smov 0  }
   0x4 LB: > { %s613_s21 = sadd.s32 4294967295, %s781_s20   ;;  %s614_s22 = sadd.s32 4294967294, %s781_s20   ;;  %s781_s20 = sphi %s829_s20, %s17_s20   ;;  %s777_s19 = sphi %s827_s19, %s948_s19   ;;  %s773_s18 = sphi %s825_s18, %s947_s18   ;;  %s769_s17 = sphi %s823_s17, %s946_s17   ;;  %s765_s16 = sphi %s821_s16, %s945_s16   ;;  %s761_s15 = sphi %s819_s15, %s944_s15  }
   0x5   : > { %s29_s23 = sadd.s32 1, %s777_s19  ;;  %s129_s24 = sadd.s32 1, %s769_s17 }
   0x6   : > { %p31_p0 = scmp.ge.s32.totalorder %s29_s23, 2  ;;  %p139_p1 = scmp.ne.s32.totalorder %s769_s17, %s765_s16 }
   0x7   : > { %p140_p2 = scmp.eq.s32.totalorder %s613_s21, 1  ;;  %p145_p3 = scmp.ne.s32.totalorder %s765_s16, %s761_s15 }
   0x8   : > { %s950_s23 = smov (%p31_p0, %s29_s23), 0  ;;  %p146_p5 = scmp.eq.s32.totalorder %s614_s22, 1 }
   0x9   : > { %p859_p4 = por %p140_p2, %p139_p1  ;;  %s124_s26 = ssub.s32 %s777_s19, %s950_s23 }
   0xa   : > { %p617_p6 = scmp.ge.s32.totalorder %s781_s20, 1  ;;  %p127_p7 = scmp.eq.s32.totalorder %s124_s26, 0 }
   0xb   : > { %p866_p8 = por %p146_p5, %p145_p3  ;;  %p186_p9 = scmp.lt.s32.totalorder %s781_s20, 3 }
   0xc   : > { %s872_s28 = scalar_select %p127_p7, %s769_s17, %s129_s24  }
   0xd   : > { %p187_p10 = pnand %p617_p6, %p186_p9 }
   0xe   : > { %p217_p11 = scmp.lt.s32.totalorder (!%p187_p10), %s773_s18, 1  ;;  %s784_s14 = smov (!%p187_p10), 112  }
   0xf   : > { %190 = sbr.rel (%p187_p10) target bundleno = 667 (0x29b), region = 36  ;;  %s785_s24 = smov (!%p187_p10), 64  }
  0x10   : > { %s786_s26 = smov (!%p187_p10), 96   ;;  %s787_s29 = smov (!%p187_p10), 32  }
  0x11   : > { %s788_s30 = smov (!%p187_p10), 16   ;;  %s791_s7 = smov (!%p187_p10), 24  }
  0x12   : > { %s792_s8 = smov (!%p187_p10), 56   ;;  %s213_s10 = sand.u32 (!%p187_p10), 1, %s765_s16  }
  0x13   : > { %s618_s11 = sshll.u32 (!%p187_p10), %s213_s10, 3  ;;  %s632_s12 = sshll.u32 (!%p187_p10), %s773_s18, 3 }
  0x14   : > { %v783_v0 = vmov 0   ;;  %v229_v1 = vld [vmem:[%s939_s2] sm:$0xff]  ;;  %s218_s5 = scalar_select %p217_p11, %s773_s18, 1  ;;  %vm243_vm0 = vcmask 1041408   ;;  %vm239_vm1 = vcmask 31744   ;;  %v277_v8 = vld [vmem:[%s940_s3 + $0x8] sm:$0xff] }
  0x15   : > { %702 = vset.pattern.permute.xlu0 %v783_v0  ;;  %v228_v7 = vld [vmem:[%s938_s1] sm:$0xf]  ;;  %301 = vmatpush.msra.mxu2 %v277_v8  ;;  %vm283_vm2 = vcmask 130048   ;;  %vm507_vm3 = vcmask 64512   ;;  %vm510_vm4 = vcmask 195584   ;;  %vm512_vm5 = vcmask 261120   ;;  %s534_s21 = scalar_lea.hbm %s941_s4, %s632_s12 }
  0x16   : > { %232 = vperm.xlu0 %702, %v229_v1   ;;  %s635_s6 = sshll.u32 %s218_s5, 2  ;;  %325 = vmatpush.msra.mxu3 %v277_v8  ;;  %v276_v18 = vld [vmem:[%s940_s3] sm:$0xff]  ;;  %s789_s5 = smov 40   ;;  %vm514_vm6 = vcmask 326656   ;;  %vm516_vm7 = vcmask 392192   ;;  %vm518_vm8 = vcmask 457728  }
  0x17   : > { %s224_s9 = scalar_lea.vmem %s937_s0, %s635_s6  ;;  %302 = vmatpush.msra.mxu2 %v276_v18  ;;  %s790_s6 = smov 8   ;;  %vm520_vm9 = vcmask 523264  }
  0x18   : > { %v227_v2 = vld [vmem:[%s224_s9] sm:$0xf]  ;;  %326 = vmatpush.msra.mxu3 %v276_v18  ;;  %s793_s9 = smov 48   ;;  %s215_s22 = scalar_lea.vmem [#allocation2], %s618_s11 }
  0x19   : > { %236 = vst [vmem:[#allocation1] ss:$4 sm:$0xff] %v227_v2  ;;  %349 = vmatpush.msrb.mxu2 %v277_v8  ;;  %s523_s18 = scalar_lea.sflag [#allocation3], %s213_s10 }
  0x1a   : > { %373 = vmatpush.msrb.mxu3 %v277_v8 }
  0x1b   : > { %350 = vmatpush.msrb.mxu2 %v276_v18 }
  0x1c   : > { %374 = vmatpush.msrb.mxu3 %v276_v18 }
  0x20   : > { %v237_v3 = vld.sshfl [vmem:[#allocation1] sm:$0xff pattern:$0x73625140]  ;;  %v238_v4 = vld.sshfl [vmem:[#allocation1 + $0x8] sm:$0xff pattern:$0x73625140] }
  0x21   : > { %v244_v5 = vsel %vm243_vm0, %v237_v3, 0  ;;  %v246_v6 = vsel %vm243_vm0, %v238_v4, 0 }
  0x22   : > { %255 = vmatpush.bf16.msra.mxu0 %v244_v5  ;;  %268 = vmatpush.bf16.msra.mxu1 %v246_v6 }
  0x25   : > { %621 = vmatmul.msk.bf16.vlgmr.msra.gmra.mxu0 %vm239_vm1, %v228_v7  ;;  %622 = vmatmul.msk.bf16.vlgmr.msra.gmra.mxu1 %vm239_vm1, %v228_v7 }
  0x26   : > { %401 = vmatpush.msrb.mxu0 %v277_v8  ;;  %425 = vmatpush.msrb.mxu1 %v277_v8 }
  0x28   : > { %402 = vmatpush.msrb.mxu0 %v276_v18  ;;  %426 = vmatpush.msrb.mxu1 %v276_v18 }
  0x88   : > { %v233_v9 = vpop.permute.xlu0 %232 }
  0xa2   : > { %v257_v10 = vpop.f32.mrf.mxu0  ;;  %v270_v11 = vpop.f32.mrf.mxu1 }
  0xa3   : > { %v258_v12 = vadd.f32 %v257_v10, %v233_v9  ;;  %v271_v13 = vadd.f32 %v270_v11, %v233_v9 }
  0xa5   : > { %v274_v14 = vmax.f32 %v258_v12, 0.0  ;;  %v275_v15 = vmax.f32 %v271_v13, 0.0 }
  0xa7   : > { %380 = vrot.lane.b32.xlu1 %v275_v15, %s784_s14  ;;  %279 = vrot.lane.b32.xlu0 %v274_v14, %s784_s14 }
  0xaa   : > { %v259_v16 = vpop.f32.mrf.mxu0  ;;  %v272_v17 = vpop.f32.mrf.mxu1 }
 0x119   : > { %v381_v19 = vpop.permute.xlu1 %380  ;;  %v280_v20 = vpop.permute.xlu0 %279 }
 0x11a   : > { %v383_v21 = vadd.f32 %v381_v19, %v275_v15  ;;  %v282_v22 = vadd.f32 %v280_v20, %v274_v14 }
 0x11c   : > { %627 = vmatmul.msk.f32.vlgmr.msrb.gmra.mxu0 %vm283_vm2, %v383_v21  ;;  %431 = vrot.lane.b32.xlu0 %v383_v21, %s785_s24 }
 0x11d   : > { %331 = vrot.lane.b32.xlu2 %v282_v22, %s785_s24  ;;  %307 = vrot.lane.b32.xlu1 %v282_v22, %s786_s26  ;;  %s536_s24 = sshll.u32 %s215_s22, 4  ;;  %s537_s24 = int_to_ptr.vmem [resolvable:$true] %s536_s24 }
 0x11e   : > { %623 = vmatmul.msk.f32.vlgmr.msra.gmra.mxu2 %vm283_vm2, %v282_v22 }
 0x11f   : > { %449 = vmatpush.msra.mxu2 %v277_v8 }
 0x121   : > { %450 = vmatpush.msra.mxu2 %v276_v18 }
 0x125   : > { %355 = vrot.lane.b32.xlu2 %v282_v22, %s787_s29  ;;  %455 = vrot.lane.b32.xlu1 %v383_v21, %s787_s29 }
 0x12d   : > { %407 = vrot.lane.b32.xlu2 %v383_v21, %s786_s26  ;;  %s538_s26 = sshll.u32 %s534_s21, 4  ;;  %s539_s26 = int_to_ptr.hbm [resolvable:$true] %s538_s26 }
 0x177   : > { %v332_v23 = vpop.permute.xlu2 %331 }
 0x178   : > { %625 = vmatmul.msk.f32.vlgmr.msrb.gmra.mxu2 %vm283_vm2, %v332_v23 }
 0x17f   : > { %v356_v24 = vpop.permute.xlu2 %355 }
 0x187   : > { %v408_v25 = vpop.permute.xlu2 %407 }
 0x188   : > { %628 = vmatmul.msk.f32.vlgmr.msrb.gmra.mxu1 %vm283_vm2, %v408_v25 }
 0x18e   : > { %v432_v26 = vpop.permute.xlu0 %431 }
 0x18f   : > { %v308_v27 = vpop.permute.xlu1 %307  ;;  %629 = vmatmul.msk.f32.vlgmr.msra.gmra.mxu2 %vm283_vm2, %v432_v26 }
 0x190   : > { %624 = vmatmul.msk.f32.vlgmr.msra.gmra.mxu3 %vm283_vm2, %v308_v27 }
 0x191   : > { %473 = vmatpush.msra.mxu3 %v277_v8 }
 0x193   : > { %474 = vmatpush.msra.mxu3 %v276_v18 }
 0x197   : > { %v456_v29 = vpop.permute.xlu1 %455 }
 0x198   : > { %626 = vmatmul.msk.f32.vlgmr.msrb.gmra.mxu3 %vm283_vm2, %v356_v24 }
 0x199   : > { %v404_v28 = vpop.f32.mrf.mxu0 }
 0x19a   : > { %492 = vrot.lane.b32.xlu0 %v404_v28, %s787_s29  ;;  %s717_s29 = sshra.s32 %s539_s26, 4  ;;  %s718_s29 = int_to_ptr.hbm [resolvable:$true] %s717_s29 }
 0x19b   : > { %p724_p1 = scmp.lt.s32.totalorder %s718_s29, %s941_s4 }
 0x1a0   : > { %630 = vmatmul.msk.f32.vlgmr.msra.gmra.mxu3 %vm283_vm2, %v456_v29 }
 0x1a1   : > { %v304_v30 = vpop.f32.mrf.mxu2 }
 0x1fb   : > { %v352_v31 = vpop.f32.mrf.mxu2 }
 0x1fc   : > { %484 = vrot.lane.b32.xlu1 %v352_v31, %s788_s30  ;;  %s719_s30 = scalar_lea.hbm %s718_s29, 8 }
 0x1fd   : > { %p720_p12 = scmp.ne.s32.totalorder %s718_s29, %s719_s30 }
 0x1ff   : > { %p721_p13 = pnand %p720_p12, %p859_p4 }
 0x201   : > { %p722_p0 = pneg %p721_p13 }
 0x205   : > { %v428_v32 = vpop.f32.mrf.mxu1 }
 0x206   : > { %496 = vrot.lane.b32.xlu1 %v428_v32, %s789_s5 }
 0x20c   : > { %v493_v37 = vpop.permute.xlu0 %492 }
 0x212   : > { %v452_v35 = vpop.f32.mrf.mxu2 }
 0x213   : > { %v328_v33 = vpop.f32.mrf.mxu3 }
 0x214   : > { %480 = vrot.lane.b32.xlu0 %v328_v33, %s790_s6 }
 0x21b   : > { %v376_v34 = vpop.f32.mrf.mxu3 }
 0x21c   : > { %488 = vrot.lane.b32.xlu2 %v376_v34, %s791_s7  ;;  %s723_s7 = scalar_lea.hbm %s941_s4, 16 }
 0x21d   : > { %p725_p2 = scmp.lt.s32.totalorder %s723_s7, %s719_s30 }
 0x21f   : > { %p726_p3 = por %p725_p2, %p724_p1 }
 0x221   : > { %p727_p5 = pnand %p726_p3, %p722_p0 }
 0x223   : > { %v476_v36 = vpop.f32.mrf.mxu3 }
 0x224   : > { %504 = vrot.lane.b32.xlu0 %v476_v36, %s792_s8  ;;  %500 = vrot.lane.b32.xlu2 %v452_v35, %s793_s9 }
 0x26e   : > { %v485_v40 = vpop.permute.xlu1 %484 }
 0x276   : > { %v489_v42 = vpop.permute.xlu2 %488 }
 0x278   : > { %v497_v45 = vpop.permute.xlu1 %496 }
 0x27e   : > { %v501_v47 = vpop.permute.xlu2 %500 }
 0x286   : > { %v481_v38 = vpop.permute.xlu0 %480 }
 0x287   : > { %v508_v39 = vsel %vm507_vm3, %v304_v30, %v481_v38 }
 0x288   : > { %v509_v41 = vsel %vm283_vm2, %v508_v39, %v485_v40 }
 0x289   : > { %v511_v43 = vsel %vm510_vm4, %v509_v41, %v489_v42 }
 0x28a   : > { %v513_v44 = vsel %vm512_vm5, %v511_v43, %v493_v37 }
 0x28b   : > { %v515_v46 = vsel %vm514_vm6, %v513_v44, %v497_v45 }
 0x28c   : > { %v517_v48 = vsel %vm516_vm7, %v515_v46, %v501_v47 }
 0x296   : > { %v505_v49 = vpop.permute.xlu0 %504 }
 0x297   : > { %v519_v50 = vsel %vm518_vm8, %v517_v48, %v505_v49 }
 0x298   : > { %521 = vst.msk [vmem:[%s215_s22] sm:$0xff] %vm520_vm9, %v519_v50 }
 0x299   : > { %730 = shalt.err (!%p727_p5)
}
 0x29a   : > { %636 = dma.vmem_to_hbm [thread:$0]  (%p859_p4), %s537_s24, 128, %s539_s26, %s523_s18  }
 0x29b PF: > { %p642_p6 = scmp.ge.s32.totalorder %s781_s20, 2  ;;  %s550_s10 = sand.u32 1, %s761_s15  }
 0x29c   : > { %s551_s11 = scalar_lea.sflag [#allocation3], %s550_s10 }
 0x29d   : > { %p639_p7 = pnand %p642_p6, %p866_p8 }
 0x29f   : > { %p640_p9 = pneg %p639_p7 }
 0x2a1   : > { %756 = dma.done.wait (%p640_p9), %s551_s11, 128  }
 0x2a2   : > { %758 = vsyncadd (%p640_p9), %s551_s11, 4294967168  ;;  %s17_s20 = sadd.s32 1, %s781_s20   ;;  %s944_s15 = smov %s765_s16 }
 0x2a3   : > { %p14_p10 = scmp.ge.s32.totalorder %s17_s20, 4   ;;  %s945_s16 = smov %s769_s17 }
 0x2a4   : > { %s946_s17 = smov %s872_s28  ;;  %s947_s18 = smov %s777_s19 }
 0x2a5   : > { %s948_s19 = smov %s950_s23  ;;  %16 = sbr.rel (!%p14_p10) target bundleno = 4 (0x4), region = 71 }
 0x2aa   :  { %557 = vsyncpa [#allocation3], 1 }
 0x2ab   :  { %559 = vsyncpa [#allocation3 + $0x1], 1 }

</bundles_post_ra>
